<compile_context>
chip_gen: v6e
topology: v6e:2x2x1
jax: 0.10.0
libtpu: 0.0.40
codegen_flags: <defaults>
</compile_context>

<pallas_src>
import functools

import jax
import jax.numpy as jnp
from jax.experimental import pallas as pl
from jax.experimental.pallas import tpu as pltpu


def _round_up(x, m):
    return ((x + m - 1) // m) * m


def actor_critic_kernel(x_ref, w1_ref, b1_ref, w2_ref, b2_ref,
                        wh_ref, bh_ref, out_ref, *, num_actions):
    # fc1 + relu  (K = state_size, unpadded; maps fine onto the MXU)
    x = x_ref[...]
    h1 = jnp.dot(x, w1_ref[...], preferred_element_type=jnp.float32) + b1_ref[...]
    h1 = jnp.maximum(h1, 0.0)
    # fc2 + relu
    h2 = jnp.dot(h1, w2_ref[...], preferred_element_type=jnp.float32) + b2_ref[...]
    h2 = jnp.maximum(h2, 0.0)
    # Fused head: one matmul -> logits in lanes [0, A), value in lane A, padding after.
    head = jnp.dot(h2, wh_ref[...], preferred_element_type=jnp.float32) + bh_ref[...]

    lane = jax.lax.broadcasted_iota(jnp.int32, head.shape, dimension=1)
    is_logit = lane < num_actions

    # log_softmax over logit lanes only. The max is taken over logit lanes
    # (finfo.min/2 sentinel elsewhere), and the non-logit exp terms are zeroed
    # exactly, so padding/value lanes cannot perturb the logsumexp.
    neg_big = jnp.float32(jnp.finfo(jnp.float32).min) * 0.5
    masked = jnp.where(is_logit, head, neg_big)
    m = jnp.max(masked, axis=1, keepdims=True)
    exp_terms = jnp.where(is_logit, jnp.exp(head - m), 0.0)
    lse = jnp.log(jnp.sum(exp_terms, axis=1, keepdims=True))
    logp = head - m - lse

    # Single lane-dense store: log-probs in lanes < A, raw head (value) elsewhere.
    out_ref[...] = jnp.where(is_logit, logp, head)


def pack_params(params, state_size, action_size, hidden):
    """Pad hidden/head dims to multiples of 128 and fuse the two heads.

    The input (state) dim is intentionally left unpadded."""
    h1, h2 = hidden
    h1_pad = _round_up(h1, 128)
    h2_pad = _round_up(h2, 128)
    head_pad = _round_up(action_size + 1, 128)  # keep exactly 128: lane-dense min

    w1 = jnp.zeros((state_size, h1_pad), jnp.float32).at[:, :h1].set(params["w1"])
    b1 = jnp.zeros((1, h1_pad), jnp.float32).at[:, :h1].set(params["b1"])
    w2 = jnp.zeros((h1_pad, h2_pad), jnp.float32).at[:h1, :h2].set(params["w2"])
    b2 = jnp.zeros((1, h2_pad), jnp.float32).at[:, :h2].set(params["b2"])
    wh = (jnp.zeros((h2_pad, head_pad), jnp.float32)
          .at[:h2, :action_size].set(params["w3"])
          .at[:h2, action_size].set(params["w4"][:, 0]))
    bh = (jnp.zeros((1, head_pad), jnp.float32)
          .at[:, :action_size].set(params["b3"])
          .at[:, action_size].set(params["b4"][:, 0]))
    return dict(w1=w1, b1=b1, w2=w2, b2=b2, wh=wh, bh=bh)


@functools.partial(jax.jit, static_argnames=("action_size",))
def actor_critic_forward(state, packed, action_size):
    """state: (B, state_size) f32. Returns (log_probs (B, A), values (B, 1))."""
    B, S = state.shape
    h1_pad = packed["w1"].shape[1]
    h2_pad = packed["w2"].shape[1]
    head_pad = packed["wh"].shape[1]

    # Batch tile: large enough to amortize per-grid-step overhead; for big B
    # ensure >= 2 grid steps so v7x's two TensorCores both get work.
    if B > 1024:
        TB = min(2048, _round_up(pl.cdiv(B, 2), 8))
    else:
        TB = _round_up(max(B, 8), 8)
    b_pad = _round_up(B, TB)

    # Only the batch dim is padded. Padded rows compute relu(bias) garbage that
    # is sliced off below -- intentional and harmless; do not "fix".
    x = state if b_pad == B else jnp.zeros((b_pad, S), jnp.float32).at[:B].set(state)

    weight_bytes = sum(int(v.size) * 4 for v in packed.values())
    cost = pl.CostEstimate(
        flops=2 * b_pad * (S * h1_pad + h1_pad * h2_pad + h2_pad * head_pad),
        transcendentals=b_pad * (head_pad + 1),
        bytes_accessed=weight_bytes + 4 * b_pad * (S + head_pad),
    )

    # Explicit VMEM budget (matters on v7x: 64 MiB physical / 32 MiB scoped):
    # double-buffered x & out tiles + weights + ~8 live (TB, 128) f32 temps.
    wide = max(h1_pad, h2_pad, head_pad)
    vmem_est = 4 * (2 * TB * S + 2 * TB * head_pad + 8 * TB * wide) + 2 * weight_bytes
    vmem_bytes = min(max(2 * int(vmem_est), 16 << 20), 64 << 20)

    kernel = functools.partial(actor_critic_kernel, num_actions=action_size)
    out = pl.pallas_call(
        kernel,
        out_shape=jax.ShapeDtypeStruct((b_pad, head_pad), jnp.float32),
        grid_spec=pltpu.PrefetchScalarGridSpec(
            num_scalar_prefetch=0,
            grid=(b_pad // TB,),
            in_specs=[
                pl.BlockSpec((TB, S), lambda i: (i, 0)),            # state tile (unpadded lanes)
                pl.BlockSpec((S, h1_pad), lambda i: (0, 0)),        # w1 (VMEM resident)
                pl.BlockSpec((1, h1_pad), lambda i: (0, 0)),        # b1
                pl.BlockSpec((h1_pad, h2_pad), lambda i: (0, 0)),   # w2
                pl.BlockSpec((1, h2_pad), lambda i: (0, 0)),        # b2
                pl.BlockSpec((h2_pad, head_pad), lambda i: (0, 0)), # fused head W
                pl.BlockSpec((1, head_pad), lambda i: (0, 0)),      # fused head b
            ],
            out_specs=pl.BlockSpec((TB, head_pad), lambda i: (i, 0)),
        ),
        compiler_params=pltpu.CompilerParams(
            dimension_semantics=("parallel",),
            vmem_limit_bytes=vmem_bytes),
        cost_estimate=cost,
    )(x, packed["w1"], packed["b1"], packed["w2"], packed["b2"],
      packed["wh"], packed["bh"])

    log_probs = out[:B, :action_size]
    values = out[:B, action_size:action_size + 1]
    return log_probs, values


def init_params(key, state_size, action_size, hidden=(128, 128)):
    """PyTorch-style uniform init; weights stored as (in, out), biases (1, out)."""
    def linear(key, fan_in, fan_out):
        kw, kb = jax.random.split(key)
        bound = 1.0 / jnp.sqrt(fan_in)
        w = jax.random.uniform(kw, (fan_in, fan_out), jnp.float32, -bound, bound)
        b = jax.random.uniform(kb, (1, fan_out), jnp.float32, -bound, bound)
        return w, b

    k1, k2, k3, k4 = jax.random.split(key, 4)
    w1, b1 = linear(k1, state_size, hidden[0])
    w2, b2 = linear(k2, hidden[0], hidden[1])
    w3, b3 = linear(k3, hidden[1], action_size)
    w4, b4 = linear(k4, hidden[1], 1)
    return dict(w1=w1, b1=b1, w2=w2, b2=b2, w3=w3, b3=b3, w4=w4, b4=b4)


def reference_forward(state, params):
    h1 = jnp.maximum(state @ params["w1"] + params["b1"], 0.0)
    h2 = jnp.maximum(h1 @ params["w2"] + params["b2"], 0.0)
    logits = h2 @ params["w3"] + params["b3"]
    logp = logits - jax.scipy.special.logsumexp(logits, axis=1, keepdims=True)
    value = h2 @ params["w4"] + params["b4"]
    return logp, value


if __name__ == "__main__":
    key = jax.random.PRNGKey(0)
    kp, kx = jax.random.split(key)

    batch = 8
    state_size = 16
    action_size = 4
    hidden = (32, 32)

    params = init_params(kp, state_size, action_size, hidden)
    packed = pack_params(params, state_size, action_size, hidden)
    state = jax.random.normal(kx, (batch, state_size), jnp.float32)

    logp, value = actor_critic_forward(state, packed, action_size)
    jax.block_until_ready((logp, value))

    ref_logp, ref_value = reference_forward(state, params)
    assert logp.shape == (batch, action_size)
    assert value.shape == (batch, 1)
    assert jnp.allclose(logp, ref_logp, atol=1e-5, rtol=1e-5)
    assert jnp.allclose(value, ref_value, atol=1e-5, rtol=1e-5)

    print("KERNEL_OK")
</pallas_src>

<mosaic_0001>
module attributes {stable_mosaic.version = 11 : i64} {
  func.func @actor_critic_kernel(%arg0: i32, %arg1: memref<8x16xf32, #tpu.memory_space<vmem>>, %arg2: memref<16x128xf32, #tpu.memory_space<vmem>>, %arg3: memref<1x128xf32, #tpu.memory_space<vmem>>, %arg4: memref<128x128xf32, #tpu.memory_space<vmem>>, %arg5: memref<1x128xf32, #tpu.memory_space<vmem>>, %arg6: memref<128x128xf32, #tpu.memory_space<vmem>>, %arg7: memref<1x128xf32, #tpu.memory_space<vmem>>, %arg8: memref<8x128xf32, #tpu.memory_space<vmem>>) attributes {dimension_semantics = [#tpu.dimension_semantics<parallel>], iteration_bounds = array<i64: 1>, scalar_prefetch = 0 : i64, scratch_operands = 0 : i64, tpu.core_type = #tpu.core_type<tc>, window_params = [{transform_indices = @transform_0, window_bounds = array<i64: 8, 16>}, {pipeline_mode = #tpu.pipeline_mode<synchronous>, transform_indices = @transform_1, window_bounds = array<i64: 16, 128>}, {pipeline_mode = #tpu.pipeline_mode<synchronous>, transform_indices = @transform_2, window_bounds = array<i64: 1, 128>}, {pipeline_mode = #tpu.pipeline_mode<synchronous>, transform_indices = @transform_3, window_bounds = array<i64: 128, 128>}, {pipeline_mode = #tpu.pipeline_mode<synchronous>, transform_indices = @transform_4, window_bounds = array<i64: 1, 128>}, {pipeline_mode = #tpu.pipeline_mode<synchronous>, transform_indices = @transform_5, window_bounds = array<i64: 128, 128>}, {pipeline_mode = #tpu.pipeline_mode<synchronous>, transform_indices = @transform_6, window_bounds = array<i64: 1, 128>}, {transform_indices = @transform_7, window_bounds = array<i64: 8, 128>}]} {
    %c0 = arith.constant 0 : index
    %c0_0 = arith.constant 0 : index
    %0 = vector.load %arg1[%c0, %c0_0] : memref<8x16xf32, #tpu.memory_space<vmem>>, vector<8x16xf32>
    %c0_1 = arith.constant 0 : index
    %c0_2 = arith.constant 0 : index
    %1 = vector.load %arg2[%c0_1, %c0_2] : memref<16x128xf32, #tpu.memory_space<vmem>>, vector<16x128xf32>
    %cst = arith.constant dense<0.000000e+00> : vector<8x128xf32>
    %2 = tpu.matmul %0, %1, %cst {dimension_numbers = #tpu.dot_dimension_numbers<[1], [0], [0], [1], [0, 0, 1, 1], [], []>} : vector<8x16xf32>, vector<16x128xf32>, vector<8x128xf32> -> vector<8x128xf32>
    %c0_3 = arith.constant 0 : index
    %c0_4 = arith.constant 0 : index
    %3 = vector.load %arg3[%c0_3, %c0_4] : memref<1x128xf32, #tpu.memory_space<vmem>>, vector<1x128xf32>
    %4 = vector.broadcast %3 : vector<1x128xf32> to vector<8x128xf32>
    %5 = arith.addf %2, %4 : vector<8x128xf32>
    %cst_5 = arith.constant 0.000000e+00 : f32
    %6 = vector.broadcast %cst_5 : f32 to vector<8x128xf32>
    %7 = arith.maximumf %5, %6 : vector<8x128xf32>
    %c0_6 = arith.constant 0 : index
    %c0_7 = arith.constant 0 : index
    %8 = vector.load %arg4[%c0_6, %c0_7] : memref<128x128xf32, #tpu.memory_space<vmem>>, vector<128x128xf32>
    %cst_8 = arith.constant dense<0.000000e+00> : vector<8x128xf32>
    %9 = tpu.matmul %7, %8, %cst_8 {dimension_numbers = #tpu.dot_dimension_numbers<[1], [0], [0], [1], [0, 0, 1, 1], [], []>} : vector<8x128xf32>, vector<128x128xf32>, vector<8x128xf32> -> vector<8x128xf32>
    %c0_9 = arith.constant 0 : index
    %c0_10 = arith.constant 0 : index
    %10 = vector.load %arg5[%c0_9, %c0_10] : memref<1x128xf32, #tpu.memory_space<vmem>>, vector<1x128xf32>
    %11 = vector.broadcast %10 : vector<1x128xf32> to vector<8x128xf32>
    %12 = arith.addf %9, %11 : vector<8x128xf32>
    %cst_11 = arith.constant 0.000000e+00 : f32
    %13 = vector.broadcast %cst_11 : f32 to vector<8x128xf32>
    %14 = arith.maximumf %12, %13 : vector<8x128xf32>
    %c0_12 = arith.constant 0 : index
    %c0_13 = arith.constant 0 : index
    %15 = vector.load %arg6[%c0_12, %c0_13] : memref<128x128xf32, #tpu.memory_space<vmem>>, vector<128x128xf32>
    %cst_14 = arith.constant dense<0.000000e+00> : vector<8x128xf32>
    %16 = tpu.matmul %14, %15, %cst_14 {dimension_numbers = #tpu.dot_dimension_numbers<[1], [0], [0], [1], [0, 0, 1, 1], [], []>} : vector<8x128xf32>, vector<128x128xf32>, vector<8x128xf32> -> vector<8x128xf32>
    %c0_15 = arith.constant 0 : index
    %c0_16 = arith.constant 0 : index
    %17 = vector.load %arg7[%c0_15, %c0_16] : memref<1x128xf32, #tpu.memory_space<vmem>>, vector<1x128xf32>
    %18 = vector.broadcast %17 : vector<1x128xf32> to vector<8x128xf32>
    %19 = arith.addf %16, %18 : vector<8x128xf32>
    %20 = tpu.iota {dimensions = array<i32: 1>} : vector<8x128xi32>
    %c4_i32 = arith.constant 4 : i32
    %21 = vector.broadcast %c4_i32 : i32 to vector<8x128xi32>
    %22 = arith.cmpi slt, %20, %21 : vector<8x128xi32>
    %cst_17 = arith.constant -3.40282347E+38 : f32
    %cst_18 = arith.constant 5.000000e-01 : f32
    %23 = arith.mulf %cst_17, %cst_18 : f32
    %24 = vector.broadcast %23 : f32 to vector<8x128xf32>
    %25 = arith.select %22, %19, %24 : vector<8x128xi1>, vector<8x128xf32>
    %cst_19 = arith.constant dense<0xFF800000> : vector<8xf32>
    %26 = vector.multi_reduction <maximumf>, %25, %cst_19 [1] : vector<8x128xf32> to vector<8xf32>
    %27 = vector.shape_cast %26 : vector<8xf32> to vector<8x1xf32>
    %28 = vector.broadcast %27 : vector<8x1xf32> to vector<8x128xf32>
    %29 = arith.subf %19, %28 : vector<8x128xf32>
    %30 = math.exp %29 : vector<8x128xf32>
    %cst_20 = arith.constant 0.000000e+00 : f32
    %31 = vector.broadcast %cst_20 : f32 to vector<8x128xf32>
    %32 = arith.select %22, %30, %31 : vector<8x128xi1>, vector<8x128xf32>
    %cst_21 = arith.constant dense<0.000000e+00> : vector<8xf32>
    %33 = vector.multi_reduction <add>, %32, %cst_21 [1] : vector<8x128xf32> to vector<8xf32>
    %34 = vector.shape_cast %33 : vector<8xf32> to vector<8x1xf32>
    %35 = math.log %34 : vector<8x1xf32>
    %36 = vector.broadcast %27 : vector<8x1xf32> to vector<8x128xf32>
    %37 = arith.subf %19, %36 : vector<8x128xf32>
    %38 = vector.broadcast %35 : vector<8x1xf32> to vector<8x128xf32>
    %39 = arith.subf %37, %38 : vector<8x128xf32>
    %40 = arith.select %22, %39, %19 : vector<8x128xi1>, vector<8x128xf32>
    %c0_22 = arith.constant 0 : index
    %c0_23 = arith.constant 0 : index
    %41 = vector.load %arg8[%c0_22, %c0_23] : memref<8x128xf32, #tpu.memory_space<vmem>>, vector<8x128xf32>
    tpu.vector_store %arg8[%c0_22, %c0_23], %40 {strides = array<i32>} : memref<8x128xf32, #tpu.memory_space<vmem>>, vector<8x128xf32>,
    return
  }
  func.func @transform_0(%arg0: i32) -> (i32, i32) {
    %c0_i32 = arith.constant 0 : i32
    %c0_i32_0 = arith.constant 0 : i32
    return %arg0, %c0_i32 : i32, i32
  }
  func.func @transform_1(%arg0: i32) -> (i32, i32) {
    %c0_i32 = arith.constant 0 : i32
    %c0_i32_0 = arith.constant 0 : i32
    %c0_i32_1 = arith.constant 0 : i32
    return %c0_i32, %c0_i32_0 : i32, i32
  }
  func.func @transform_2(%arg0: i32) -> (i32, i32) {
    %c0_i32 = arith.constant 0 : i32
    %c0_i32_0 = arith.constant 0 : i32
    %c0_i32_1 = arith.constant 0 : i32
    return %c0_i32, %c0_i32_0 : i32, i32
  }
  func.func @transform_3(%arg0: i32) -> (i32, i32) {
    %c0_i32 = arith.constant 0 : i32
    %c0_i32_0 = arith.constant 0 : i32
    %c0_i32_1 = arith.constant 0 : i32
    return %c0_i32, %c0_i32_0 : i32, i32
  }
  func.func @transform_4(%arg0: i32) -> (i32, i32) {
    %c0_i32 = arith.constant 0 : i32
    %c0_i32_0 = arith.constant 0 : i32
    %c0_i32_1 = arith.constant 0 : i32
    return %c0_i32, %c0_i32_0 : i32, i32
  }
  func.func @transform_5(%arg0: i32) -> (i32, i32) {
    %c0_i32 = arith.constant 0 : i32
    %c0_i32_0 = arith.constant 0 : i32
    %c0_i32_1 = arith.constant 0 : i32
    return %c0_i32, %c0_i32_0 : i32, i32
  }
  func.func @transform_6(%arg0: i32) -> (i32, i32) {
    %c0_i32 = arith.constant 0 : i32
    %c0_i32_0 = arith.constant 0 : i32
    %c0_i32_1 = arith.constant 0 : i32
    return %c0_i32, %c0_i32_0 : i32, i32
  }
  func.func @transform_7(%arg0: i32) -> (i32, i32) {
    %c0_i32 = arith.constant 0 : i32
    %c0_i32_0 = arith.constant 0 : i32
    return %arg0, %c0_i32 : i32, i32
  }
}

</mosaic_0001>

<bundles_post_ra>
// kernel: actor_critic_forward.1
= control target key start
LH: loop header
LB: loop body
LE: loop exit
PB: predicated region body
PF: predicated region fallthrough
CT: control target
= control target key end

     0   :  { %12 = vsyncpa [#allocation3], 0  ;;  %s715_s0 = inlined_call_operand.hbm [shape: f32[8,16], index: 0, kind: input, shape index: {}]   ;;  %s716_s1 = inlined_call_operand.hbm [shape: f32[16,128], index: 1, kind: input, shape index: {}]   ;;  %s717_s2 = inlined_call_operand.vmem [shape: f32[1,128], index: 2, kind: input, shape index: {}]   ;;  %s718_s3 = inlined_call_operand.hbm [shape: f32[128,128], index: 3, kind: input, shape index: {}]   ;;  %s719_s4 = inlined_call_operand.vmem [shape: f32[1,128], index: 4, kind: input, shape index: {}]   ;;  %s720_s5 = inlined_call_operand.hbm [shape: f32[128,128], index: 5, kind: input, shape index: {}]   ;;  %s721_s6 = inlined_call_operand.vmem [shape: f32[1,128], index: 6, kind: input, shape index: {}]   ;;  %s722_s7 = inlined_call_operand.vmem [shape: f32[8,128], index: 7, kind: output, shape index: {}]  }
   0x1   :  { %13 = vsyncpa [#allocation5], 0 }
   0x2   :  { %14 = vsyncpa [#allocation8], 0  ;;  %s591_s24 = smov [#allocation4]  }
   0x3   :  { %s30_s25 = sshll.u32 %s591_s24, 4  ;;  %s31_s25 = int_to_ptr.vmem [resolvable:$true] %s30_s25 }
   0x4   :  { %s513_s26 = scalar_lea.vmem %s31_s25, 256  ;;  %p518_p1 = scmp.lt.s32.totalorder %s31_s25, %s31_s25 }
   0x5   :  { %p514_p0 = scmp.ne.s32.totalorder %s31_s25, %s513_s26  ;;  %p519_p2 = scmp.lt.s32.totalorder %s513_s26, %s513_s26 }
   0x7   :  { %p520_p3 = por %p519_p2, %p518_p1 }
   0x9   :  { %p521_p4 = pnand %p520_p3, %p514_p0 }
   0xb   :  { %524 = shalt.err (!%p521_p4)
}
   0xc   :  { %s592_s27 = smov 128   ;;  %s593_s28 = smov 8  }
   0xd   :  { %36 = dma.hbm_to_vmem [thread:$0]  %s716_s1, 256, %s31_s25, [#allocation5], %s592_s27, %s592_s27, %s593_s28  }
   0xe   :  { %s594_s8 = smov [#allocation2]   ;;  %s595_s10 = smov [#allocation6]  }
   0xf   :  { %s21_s9 = sshll.u32 %s594_s8, 4  ;;  %s44_s11 = sshll.u32 %s595_s10, 4  ;;  %s22_s9 = int_to_ptr.vmem [resolvable:$true] %s21_s9  ;;  %s45_s11 = int_to_ptr.vmem [resolvable:$true] %s44_s11 }
  0x10   :  { %s533_s12 = scalar_lea.vmem %s22_s9, 128  ;;  %p538_p6 = scmp.lt.s32.totalorder %s22_s9, %s22_s9 }
  0x11   :  { %p534_p5 = scmp.ne.s32.totalorder %s22_s9, %s533_s12  ;;  %p539_p7 = scmp.lt.s32.totalorder %s533_s12, %s533_s12 }
  0x13   :  { %p540_p8 = por %p539_p7, %p538_p6 }
  0x15   :  { %p541_p9 = pnand %p540_p8, %p534_p5 }
  0x17   :  { %544 = shalt.err (!%p541_p9)
}
  0x18   :  { %24 = dma.hbm_to_vmem [thread:$0]  %s715_s0, 128, %s22_s9, [#allocation3]  }
  0x19   :  { %s553_s15 = scalar_lea.vmem %s45_s11, 2048  ;;  %p558_p11 = scmp.lt.s32.totalorder %s45_s11, %s45_s11 }
  0x1a   :  { %p554_p10 = scmp.ne.s32.totalorder %s45_s11, %s553_s15  ;;  %p559_p12 = scmp.lt.s32.totalorder %s553_s15, %s553_s15 }
  0x1c   :  { %p560_p13 = por %p559_p12, %p558_p11 }
  0x1e   :  { %p561_p0 = pnand %p560_p13, %p554_p10 }
  0x20   :  { %564 = shalt.err (!%p561_p0)
}
  0x21   :  { %50 = dma.hbm_to_vmem [thread:$0]  %s718_s3, 2048, %s45_s11, [#allocation5], %s592_s27, %s592_s27, %s593_s28  }
  0x22   :  { %s596_s17 = smov [#allocation7]  }
  0x23   :  { %s58_s18 = sshll.u32 %s596_s17, 4  ;;  %s59_s18 = int_to_ptr.vmem [resolvable:$true] %s58_s18 }
  0x24   :  { %s573_s19 = scalar_lea.vmem %s59_s18, 2048  ;;  %p578_p2 = scmp.lt.s32.totalorder %s59_s18, %s59_s18 }
  0x25   :  { %p574_p1 = scmp.ne.s32.totalorder %s59_s18, %s573_s19  ;;  %p579_p3 = scmp.lt.s32.totalorder %s573_s19, %s573_s19 }
  0x27   :  { %p580_p4 = por %p579_p3, %p578_p2 }
  0x29   :  { %p581_p5 = pnand %p580_p4, %p574_p1 }
  0x2b   :  { %584 = shalt.err (!%p581_p5)
}
  0x2c   :  { %64 = dma.hbm_to_vmem [thread:$0]  %s720_s5, 2048, %s59_s18, [#allocation8], %s592_s27, %s592_s27, %s593_s28  }
  0x2d   :  { %585 = dma.done.wait [#allocation3], 128  }
  0x2e   :  { %586 = vsyncadd [#allocation3], 4294967168 }
  0x2f   :  { %587 = dma.done.wait [#allocation5], 2304  }
  0x30   :  { %588 = vsyncadd [#allocation5], 4294964992 }
  0x31   :  { %589 = dma.done.wait [#allocation8], 2048  }
  0x32   :  { %590 = vsyncadd [#allocation8], 4294965248  ;;  %v597_v0 = vmov 0.0   ;;  %vm598_vm0 = vmmov 0   ;;  %v81_v1 = vld [vmem:[#allocation4 + $0x8] sm:$0xff]  ;;  %v80_v2 = vld [vmem:[#allocation4] sm:$0xff]  ;;  %v351_v46 = vlaneseq }
  0x33   :  { %416 = vmatprep.subr.mxu0 %v597_v0  ;;  %420 = vmatprep.mubr.msk.f32.mxu0 %vm598_vm0, %v597_v0  ;;  %v79_v3 = vld [vmem:[#allocation2] sm:$0xff]  ;;  %vm89_vm1 = vcmask 130048   ;;  %v179_v4 = vld [vmem:[#allocation6 + $0x78] sm:$0xff]  ;;  %v178_v5 = vld [vmem:[#allocation6 + $0x70] sm:$0xff] }
  0x34   :  { %423 = vmatprep.subr.mxu1 %v597_v0  ;;  %455 = vmatprep.mubr.msk.f32.mxu1 %vm598_vm0, %v597_v0  ;;  %v177_v6 = vld [vmem:[#allocation6 + $0x68] sm:$0xff]  ;;  %v176_v7 = vld [vmem:[#allocation6 + $0x60] sm:$0xff]  ;;  %v175_v8 = vld [vmem:[#allocation6 + $0x58] sm:$0xff]  ;;  %v352_v47 = vand.u32 127, %v351_v46 }
  0x35   :  { %417 = vmatpush3.msra.mxu0 %v81_v1  ;;  %424 = vmatpush3.msra.mxu1 %v179_v4  ;;  %v174_v9 = vld [vmem:[#allocation6 + $0x50] sm:$0xff]  ;;  %v173_v10 = vld [vmem:[#allocation6 + $0x48] sm:$0xff]  ;;  %v172_v11 = vld [vmem:[#allocation6 + $0x40] sm:$0xff] }
  0x36   :  { %418 = vmatprep.subr.mxu0 %v597_v0  ;;  %425 = vmatprep.subr.mxu1 %v597_v0  ;;  %v171_v12 = vld [vmem:[#allocation6 + $0x38] sm:$0xff]  ;;  %v170_v13 = vld [vmem:[#allocation6 + $0x30] sm:$0xff]  ;;  %v169_v14 = vld [vmem:[#allocation6 + $0x28] sm:$0xff]  ;;  %vm353_vm2 = vcmp.lt.s32.totalorder %v352_v47, 4 }
  0x37   :  { %419 = vmatpush3.msra.mxu0 %v80_v2  ;;  %426 = vmatpush3.msra.mxu1 %v178_v5  ;;  %v168_v15 = vld [vmem:[#allocation6 + $0x20] sm:$0xff]  ;;  %v167_v16 = vld [vmem:[#allocation6 + $0x18] sm:$0xff]  ;;  %v166_v17 = vld [vmem:[#allocation6 + $0x10] sm:$0xff] }
  0x38   :  { %421 = vmatmul.mubr.msk.f32.vlgmr.msra.gmra.mxu0 %vm89_vm1, %v79_v3  ;;  %427 = vmatprep.subr.mxu1 %v597_v0  ;;  %v165_v18 = vld [vmem:[#allocation6 + $0x8] sm:$0xff]  ;;  %v164_v19 = vld [vmem:[#allocation6] sm:$0xff]  ;;  %v273_v20 = vld [vmem:[#allocation7 + $0x78] sm:$0xff] }
  0x39   :  { %458 = vmatprep.subr.mxu0 %v597_v0  ;;  %428 = vmatpush3.msra.mxu1 %v177_v6  ;;  %v272_v21 = vld [vmem:[#allocation7 + $0x70] sm:$0xff]  ;;  %v271_v22 = vld [vmem:[#allocation7 + $0x68] sm:$0xff]  ;;  %v270_v23 = vld [vmem:[#allocation7 + $0x60] sm:$0xff] }
  0x3a   :  { %490 = vmatprep.mubr.msk.f32.mxu0 %vm598_vm0, %v597_v0  ;;  %429 = vmatprep.subr.mxu1 %v597_v0  ;;  %v269_v24 = vld [vmem:[#allocation7 + $0x58] sm:$0xff]  ;;  %v268_v25 = vld [vmem:[#allocation7 + $0x50] sm:$0xff]  ;;  %v267_v26 = vld [vmem:[#allocation7 + $0x48] sm:$0xff] }
  0x3b   :  { %430 = vmatpush3.msra.mxu1 %v176_v7  ;;  %459 = vmatpush3.msra.mxu0 %v273_v20  ;;  %v266_v27 = vld [vmem:[#allocation7 + $0x40] sm:$0xff]  ;;  %v265_v28 = vld [vmem:[#allocation7 + $0x38] sm:$0xff]  ;;  %v264_v29 = vld [vmem:[#allocation7 + $0x30] sm:$0xff] }
  0x3c   :  { %431 = vmatprep.subr.mxu1 %v597_v0  ;;  %460 = vmatprep.subr.mxu0 %v597_v0  ;;  %v263_v30 = vld [vmem:[#allocation7 + $0x28] sm:$0xff]  ;;  %v262_v31 = vld [vmem:[#allocation7 + $0x20] sm:$0xff]  ;;  %v261_v32 = vld [vmem:[#allocation7 + $0x18] sm:$0xff] }
  0x3d   :  { %432 = vmatpush3.msra.mxu1 %v175_v8  ;;  %461 = vmatpush3.msra.mxu0 %v272_v21  ;;  %v375_v33 = vld [vmem:[%s717_s2] ss:$0 sm:$0xff]  ;;  %v260_v38 = vld [vmem:[#allocation7 + $0x10] sm:$0xff]  ;;  %v258_v40 = vld [vmem:[#allocation7] sm:$0xff] }
  0x3e   :  { %433 = vmatprep.subr.mxu1 %v597_v0  ;;  %462 = vmatprep.subr.mxu0 %v597_v0  ;;  %v259_v39 = vld [vmem:[#allocation7 + $0x8] sm:$0xff] }
  0x3f   :  { %434 = vmatpush3.msra.mxu1 %v174_v9  ;;  %463 = vmatpush3.msra.mxu0 %v271_v22  ;;  %v377_v41 = vld [vmem:[%s719_s4] ss:$0 sm:$0xff] }
  0x40   :  { %435 = vmatprep.subr.mxu1 %v597_v0  ;;  %464 = vmatprep.subr.mxu0 %v597_v0  ;;  %v378_v48 = vld [vmem:[%s721_s6] ss:$0 sm:$0xff] }
  0x41   :  { %436 = vmatpush3.msra.mxu1 %v173_v10  ;;  %465 = vmatpush3.msra.mxu0 %v270_v23 }
  0x42   :  { %437 = vmatprep.subr.mxu1 %v597_v0  ;;  %466 = vmatprep.subr.mxu0 %v597_v0 }
  0x43   :  { %438 = vmatpush3.msra.mxu1 %v172_v11  ;;  %467 = vmatpush3.msra.mxu0 %v269_v24 }
  0x44   :  { %439 = vmatprep.subr.mxu1 %v597_v0  ;;  %468 = vmatprep.subr.mxu0 %v597_v0 }
  0x45   :  { %440 = vmatpush3.msra.mxu1 %v171_v12  ;;  %469 = vmatpush3.msra.mxu0 %v268_v25 }
  0x46   :  { %441 = vmatprep.subr.mxu1 %v597_v0  ;;  %470 = vmatprep.subr.mxu0 %v597_v0 }
  0x47   :  { %442 = vmatpush3.msra.mxu1 %v170_v13  ;;  %471 = vmatpush3.msra.mxu0 %v267_v26 }
  0x48   :  { %443 = vmatprep.subr.mxu1 %v597_v0  ;;  %472 = vmatprep.subr.mxu0 %v597_v0 }
  0x49   :  { %444 = vmatpush3.msra.mxu1 %v169_v14  ;;  %473 = vmatpush3.msra.mxu0 %v266_v27 }
  0x4a   :  { %445 = vmatprep.subr.mxu1 %v597_v0  ;;  %474 = vmatprep.subr.mxu0 %v597_v0 }
  0x4b   :  { %446 = vmatpush3.msra.mxu1 %v168_v15  ;;  %475 = vmatpush3.msra.mxu0 %v265_v28 }
  0x4c   :  { %447 = vmatprep.subr.mxu1 %v597_v0  ;;  %476 = vmatprep.subr.mxu0 %v597_v0 }
  0x4d   :  { %448 = vmatpush3.msra.mxu1 %v167_v16  ;;  %477 = vmatpush3.msra.mxu0 %v264_v29 }
  0x4e   :  { %449 = vmatprep.subr.mxu1 %v597_v0  ;;  %478 = vmatprep.subr.mxu0 %v597_v0 }
  0x4f   :  { %450 = vmatpush3.msra.mxu1 %v166_v17  ;;  %479 = vmatpush3.msra.mxu0 %v263_v30 }
  0x50   :  { %451 = vmatprep.subr.mxu1 %v597_v0  ;;  %480 = vmatprep.subr.mxu0 %v597_v0 }
  0x51   :  { %452 = vmatpush3.msra.mxu1 %v165_v18  ;;  %481 = vmatpush3.msra.mxu0 %v262_v31 }
  0x52   :  { %453 = vmatprep.subr.mxu1 %v597_v0  ;;  %482 = vmatprep.subr.mxu0 %v597_v0 }
  0x53   :  { %454 = vmatpush3.msra.mxu1 %v164_v19  ;;  %483 = vmatpush3.msra.mxu0 %v261_v32 }
  0x54   :  { %484 = vmatprep.subr.mxu0 %v597_v0 }
  0x55   :  { %485 = vmatpush3.msra.mxu0 %v260_v38 }
  0x56   :  { %486 = vmatprep.subr.mxu0 %v597_v0 }
  0x57   :  { %487 = vmatpush3.msra.mxu0 %v259_v39 }
  0x58   :  { %488 = vmatprep.subr.mxu0 %v597_v0 }
  0x59   :  { %489 = vmatpush3.msra.mxu0 %v258_v40 }
  0xf8   :  { %v159_v34 = vpop.f32.mrf.mxu0 }
  0xf9   :  { %v160_v35 = vadd.f32 %v375_v33, %v159_v34 }
  0xfa   :  { %v422_v36 = vpop.f32.mrf.mxu0 }
  0xfb   :  { %v163_v37 = vmax.f32 %v160_v35, 0.0 }
  0xfd   :  { %456 = vmatmul.mubr.f32.vlgmr.msra.gmra.mxu1 %v163_v37 }
 0x1bd   :  { %v253_v42 = vpop.f32.mrf.mxu1 }
 0x1be   :  { %v254_v43 = vadd.f32 %v377_v41, %v253_v42 }
 0x1bf   :  { %v457_v44 = vpop.f32.mrf.mxu1 }
 0x1c0   :  { %v257_v45 = vmax.f32 %v254_v43, 0.0 }
 0x1c2   :  { %491 = vmatmul.mubr.f32.vlgmr.msra.gmra.mxu0 %v257_v45 }
 0x282   :  { %v347_v49 = vpop.f32.mrf.mxu0 }
 0x283   :  { %v348_v50 = vadd.f32 %v378_v48, %v347_v49 }
 0x284   :  { %v492_v51 = vpop.f32.mrf.mxu0 }
 0x285   :  { %v354_v52 = vsel %vm353_vm2, %v348_v50, -1.7014117e+38 }
 0x286   :  { %355 = vmax.xlane.f32.xlu0 %v354_v52 }
 0x30f   :  { %v356_v53 = vpop.xlane.xlu0 %355 }
 0x310   :  { %v357_v54 = vsub.f32 %v348_v50, %v356_v53 }
 0x312   :  { %v358_v55 = vmul.f32 1.442695, %v357_v54 }
 0x314   :  { %501 = vpow2.f32 %v358_v55 }
 0x321   :  { %v502_v56 = vpop.eup %501 }
 0x322   :  { %v360_v57 = vsel %vm353_vm2, %v502_v56, 0.0 }
 0x323   :  { %361 = vadd.xlane.f32.xlu0 %v360_v57 }
 0x3ac   :  { %v362_v58 = vpop.xlane.xlu0 %361 }
 0x3ad   :  { %503 = vlog2.f32 %v362_v58 }
 0x3ba   :  { %v504_v59 = vpop.eup %503 }
 0x3bb   :  { %v364_v60 = vmul.f32 0.6931472, %v504_v59 }
 0x3bd   :  { %v365_v61 = vsub.f32 %v357_v54, %v364_v60 }
 0x3bf   :  { %v366_v62 = vsel %vm353_vm2, %v365_v61, %v348_v50 }
 0x3c0   :  { %367 = vst [vmem:[%s722_s7] sm:$0xff] %v366_v62 }
 0x3c1   :  { %372 = vsyncpa [#allocation3], 1 }
 0x3c2   :  { %373 = vsyncpa [#allocation5], 1 }
 0x3c3   :  { %374 = vsyncpa [#allocation8], 1 }

</bundles_post_ra>
